<compile_context>
chip_gen: v6e
topology: v6e:2x2x1
jax: 0.10.0
libtpu: 0.0.40
codegen_flags: <defaults>
</compile_context>

<pallas_src>
import math

import jax
import jax.numpy as jnp
from jax import lax
from jax.experimental import pallas as pl
from jax.experimental.pallas import tpu as pltpu


def _round_up(x, m):
    return ((x + m - 1) // m) * m


# --------------------------- dense (no-embedding) kernel ---------------------
def _linear_kernel(x_ref, w_ref, b_ref, o_ref):
    # x_ref: [TB, F_in]   w_ref: [F_in, H]   b_ref: [1, H]   o_ref: [TB, H]
    o_ref[...] = (
        jnp.dot(x_ref[...], w_ref[...], preferred_element_type=jnp.float32)
        + b_ref[...]
    ).astype(o_ref.dtype)


def linear_pallas(x, w_t, bias2d, block_b=256):
    """x @ W.T + b with the matmul in a Pallas TPU kernel.

    x:      [B, F_in]  float32
    w_t:    [F_in, H]  pre-transposed weight (hoisted at init)
    bias2d: [1, H]
    Returns [B, H]
    """
    b, f_in = x.shape
    _, h = w_t.shape

    # Stable, pipelined batch tiling: tile is a multiple of 8, batch padded up
    # to a multiple of the tile (only when necessary).
    tb = min(block_b, _round_up(b, 8))
    b_pad = _round_up(b, tb)
    if b_pad != b:
        x = jnp.pad(x, ((0, b_pad - b), (0, 0)))
    grid = (b_pad // tb,)

    out = pl.pallas_call(
        _linear_kernel,
        out_shape=jax.ShapeDtypeStruct((b_pad, h), jnp.float32),
        grid=grid,
        in_specs=[
            pl.BlockSpec((tb, f_in), lambda i: (i, 0)),   # activations: tiled over B
            pl.BlockSpec((f_in, h), lambda i: (0, 0)),    # weight: resident
            pl.BlockSpec((1, h), lambda i: (0, 0)),       # bias:   resident
        ],
        out_specs=pl.BlockSpec((tb, h), lambda i: (i, 0)),  # real H-wide output
        compiler_params=pltpu.CompilerParams(
            dimension_semantics=("parallel",)             # megacore-shardable on v7x
        ),
    )(x, w_t, bias2d)
    return out if b_pad == b else out[:b]


# ------------------------ fused embedding + linear kernel --------------------
def _embed_linear_kernel(ids_ref, m_ref, b_ref, o_ref):
    # ids_ref: VMEM [TB, T] int32 (batch tile of token ids)
    # m_ref:   VMEM [T, n_tok_pad, H]  precomputed  M[t] = E @ W_t  (resident)
    # b_ref:   VMEM [1, H]
    # o_ref:   VMEM [TB, H]
    tb, n_tok_per_obs = ids_ref.shape
    n_tok_pad = m_ref.shape[1]
    h = o_ref.shape[1]

    ids = ids_ref[...] + 1                                  # the `observation += 1`
    iota = lax.broadcasted_iota(jnp.int32, (tb, n_tok_pad), 1)

    acc = jnp.zeros((tb, h), jnp.float32)
    # T is tiny and static (e.g. 4): vectorized one-hot gather via the MXU.
    # TODO(synk): out-of-range token ids produce an all-zero one-hot row
    # (silent zero embedding) instead of raising like PyTorch's nn.Embedding.
    for t in range(n_tok_per_obs):
        onehot = (iota == ids[:, t:t + 1]).astype(jnp.float32)
        acc = acc + jnp.dot(onehot, m_ref[t], preferred_element_type=jnp.float32)

    o_ref[...] = (acc + b_ref[...]).astype(o_ref.dtype)


def embed_linear_pallas(ids, m_table, bias2d, block_b=256):
    """Fused embedding-gather + linear via precomputed M[t] = E @ W_t.

    ids:     [B, T] int32
    m_table: [T, n_tok_pad, H] float32
    bias2d:  [1, H]
    Returns  [B, H]
    """
    b, t = ids.shape
    n_obs_tokens, n_tok_pad, h = m_table.shape
    assert t == n_obs_tokens

    tb = min(block_b, _round_up(b, 8))
    b_pad = _round_up(b, tb)
    if b_pad != b:
        ids = jnp.pad(ids, ((0, b_pad - b), (0, 0)))   # padded ids=0 -> valid row, sliced off
    grid = (b_pad // tb,)

    out = pl.pallas_call(
        _embed_linear_kernel,
        out_shape=jax.ShapeDtypeStruct((b_pad, h), jnp.float32),
        grid=grid,
        in_specs=[
            pl.BlockSpec((tb, t), lambda i: (i, 0)),                   # ids: tiled over B
            pl.BlockSpec((n_obs_tokens, n_tok_pad, h), lambda i: (0, 0, 0)),  # M resident
            pl.BlockSpec((1, h), lambda i: (0, 0)),                    # bias resident
        ],
        out_specs=pl.BlockSpec((tb, h), lambda i: (i, 0)),
        compiler_params=pltpu.CompilerParams(
            dimension_semantics=("parallel",)
        ),
    )(ids.astype(jnp.int32), m_table, bias2d)
    return out if b_pad == b else out[:b]


# --------------------------- parameter init ---------------------------------
def _orthogonal(key, shape, gain):
    """Mimics torch.nn.init.orthogonal_ for a 2-D weight of `shape`."""
    rows, cols = shape
    n, m = max(rows, cols), min(rows, cols)
    a = jax.random.normal(key, (n, m), dtype=jnp.float32)
    q, r = jnp.linalg.qr(a)
    q = q * jnp.sign(jnp.diag(r))
    if rows < cols:
        q = q.T
    return gain * q[:rows, :cols]


def make_encoder_params(key, observation_size, hidden_size=64,
                        use_embedding=False, embedding_dim=20, n_token=1000):
    k_w, k_e = jax.random.split(key)
    eff_obs = observation_size * embedding_dim if use_embedding else observation_size

    weight = _orthogonal(k_w, (hidden_size, eff_obs), math.sqrt(2.0))   # [H, F_in] torch layout
    bias = jnp.zeros((hidden_size,), dtype=jnp.float32)

    # Hoisted, one-time layout plumbing: pre-transpose to [F_in, H]; the kernel
    # output is the real H-wide array (no lane padding, no wrapper slice).
    w_t = jnp.asarray(weight.T, jnp.float32)
    bias2d = bias.reshape(1, hidden_size)

    params = {
        "weight": weight,            # original torch layout (reference only)
        "bias": bias,
        "w_t": w_t,                  # dense-kernel operand
        "bias2d": bias2d,            # kernel operand
        "hidden_size": hidden_size,
        "use_embedding": use_embedding,
        "observation_size": eff_obs,
    }

    if use_embedding:
        # nn.Embedding default init: N(0, 1)
        emb = jax.random.normal(k_e, (n_token, embedding_dim), dtype=jnp.float32)
        params["embedding"] = emb
        params["embedding_dim"] = embedding_dim

        # Algebraic precompute (one-time): M[t] = E @ W_t  with
        # W_t = W.T[t*ed:(t+1)*ed, :], so  out[b] = sum_t M[t][ids[b,t]+1] + b.
        # Token axis padded to a multiple of 128 (zero rows) so the one-hot
        # matmul contraction dim is lane-aligned; out-of-range rows are never
        # selected (ids+1 <= n_token).
        n_tok_pad = _round_up(n_token, 128)
        m = jnp.stack(
            [emb @ w_t[t * embedding_dim:(t + 1) * embedding_dim, :]
             for t in range(observation_size)],
            axis=0)                                      # [T, n_token, H]
        m_pad = jnp.zeros((observation_size, n_tok_pad, hidden_size),
                          jnp.float32).at[:, :n_token, :].set(m)
        params["m_table"] = m_pad                        # ~1 MB, VMEM-resident
    return params


# ------------------------------- forward ------------------------------------
def encoder_forward(params, observation, block_b=256):
    if params["use_embedding"]:
        return embed_linear_pallas(observation, params["m_table"],
                                   params["bias2d"], block_b=block_b)
    return linear_pallas(observation, params["w_t"], params["bias2d"],
                         block_b=block_b)


# ------------------------------- reference ----------------------------------
def encoder_forward_ref(params, observation):
    if params["use_embedding"]:
        obs = observation + 1
        emb = jnp.take(params["embedding"], obs.astype(jnp.int32), axis=0)
        x = emb.reshape(-1, params["observation_size"])
    else:
        x = observation
    return x @ params["weight"].T + params["bias"]


# --------------------------------- main --------------------------------------
if __name__ == "__main__":
    key = jax.random.PRNGKey(0)
    k_param, k_obs, k_obs_big, k_obs_odd, k_tok = jax.random.split(key, 5)

    # ---- default path: use_embedding=False (toy batch) ----
    batch = 8
    observation_size = 32
    hidden_size = 64

    params = make_encoder_params(k_param, observation_size, hidden_size)
    observation = jax.random.normal(k_obs, (batch, observation_size), dtype=jnp.float32)

    out = jax.block_until_ready(encoder_forward(params, observation))
    ref = encoder_forward_ref(params, observation)
    assert out.shape == (batch, hidden_size)
    assert jnp.allclose(out, ref, atol=1e-4, rtol=1e-4), "mismatch (no embedding)"

    # ---- larger batch: exercises the tiled 'parallel' grid (2 blocks) ----
    big_batch = 512
    observation_big = jax.random.normal(
        k_obs_big, (big_batch, observation_size), dtype=jnp.float32)
    out_big = jax.block_until_ready(encoder_forward(params, observation_big))
    ref_big = encoder_forward_ref(params, observation_big)
    assert out_big.shape == (big_batch, hidden_size)
    assert jnp.allclose(out_big, ref_big, atol=1e-4, rtol=1e-4), "mismatch (big batch)"

    # ---- non-multiple batch: exercises the cdiv/pad path ----
    odd_batch = 300
    observation_odd = jax.random.normal(
        k_obs_odd, (odd_batch, observation_size), dtype=jnp.float32)
    out_odd = jax.block_until_ready(encoder_forward(params, observation_odd))
    ref_odd = encoder_forward_ref(params, observation_odd)
    assert out_odd.shape == (odd_batch, hidden_size)
    assert jnp.allclose(out_odd, ref_odd, atol=1e-4, rtol=1e-4), "mismatch (odd batch)"

    # ---- embedding path: use_embedding=True (fused one-hot gather + add) ----
    obs_tokens = 4            # observation_size before embedding expansion
    embedding_dim = 20
    n_token = 1000
    params_e = make_encoder_params(
        k_param, obs_tokens, hidden_size,
        use_embedding=True, embedding_dim=embedding_dim, n_token=n_token)
    tokens = jax.random.randint(k_tok, (batch, obs_tokens), 0, n_token - 1,
                                dtype=jnp.int32)

    out_e = jax.block_until_ready(encoder_forward(params_e, tokens))
    ref_e = encoder_forward_ref(params_e, tokens)
    assert out_e.shape == (batch, hidden_size)
    assert jnp.allclose(out_e, ref_e, atol=1e-4, rtol=1e-4), "mismatch (embedding)"

    print("KERNEL_OK")
</pallas_src>

<mosaic_0001>
module attributes {stable_mosaic.version = 11 : i64} {
  func.func @_linear_kernel(%arg0: i32, %arg1: memref<8x32xf32, #tpu.memory_space<vmem>>, %arg2: memref<32x64xf32, #tpu.memory_space<vmem>>, %arg3: memref<1x64xf32, #tpu.memory_space<vmem>>, %arg4: memref<8x64xf32, #tpu.memory_space<vmem>>) attributes {dimension_semantics = [#tpu.dimension_semantics<parallel>], iteration_bounds = array<i64: 1>, scalar_prefetch = 0 : i64, scratch_operands = 0 : i64, tpu.core_type = #tpu.core_type<tc>, window_params = [{transform_indices = @transform_0, window_bounds = array<i64: 8, 32>}, {pipeline_mode = #tpu.pipeline_mode<synchronous>, transform_indices = @transform_1, window_bounds = array<i64: 32, 64>}, {pipeline_mode = #tpu.pipeline_mode<synchronous>, transform_indices = @transform_2, window_bounds = array<i64: 1, 64>}, {transform_indices = @transform_3, window_bounds = array<i64: 8, 64>}]} {
    %c0 = arith.constant 0 : index
    %c0_0 = arith.constant 0 : index
    %0 = vector.load %arg1[%c0, %c0_0] : memref<8x32xf32, #tpu.memory_space<vmem>>, vector<8x32xf32>
    %c0_1 = arith.constant 0 : index
    %c0_2 = arith.constant 0 : index
    %1 = vector.load %arg2[%c0_1, %c0_2] : memref<32x64xf32, #tpu.memory_space<vmem>>, vector<32x64xf32>
    %cst = arith.constant dense<0.000000e+00> : vector<8x64xf32>
    %2 = tpu.matmul %0, %1, %cst {dimension_numbers = #tpu.dot_dimension_numbers<[1], [0], [0], [1], [0, 0, 1, 1], [], []>} : vector<8x32xf32>, vector<32x64xf32>, vector<8x64xf32> -> vector<8x64xf32>
    %c0_3 = arith.constant 0 : index
    %c0_4 = arith.constant 0 : index
    %3 = vector.load %arg3[%c0_3, %c0_4] : memref<1x64xf32, #tpu.memory_space<vmem>>, vector<1x64xf32>
    %4 = vector.broadcast %3 : vector<1x64xf32> to vector<8x64xf32>
    %5 = arith.addf %2, %4 : vector<8x64xf32>
    %c0_5 = arith.constant 0 : index
    %c0_6 = arith.constant 0 : index
    %6 = vector.load %arg4[%c0_5, %c0_6] : memref<8x64xf32, #tpu.memory_space<vmem>>, vector<8x64xf32>
    tpu.vector_store %arg4[%c0_5, %c0_6], %5 {strides = array<i32>} : memref<8x64xf32, #tpu.memory_space<vmem>>, vector<8x64xf32>,
    return
  }
  func.func @transform_0(%arg0: i32) -> (i32, i32) {
    %c0_i32 = arith.constant 0 : i32
    %c0_i32_0 = arith.constant 0 : i32
    return %arg0, %c0_i32 : i32, i32
  }
  func.func @transform_1(%arg0: i32) -> (i32, i32) {
    %c0_i32 = arith.constant 0 : i32
    %c0_i32_0 = arith.constant 0 : i32
    %c0_i32_1 = arith.constant 0 : i32
    return %c0_i32, %c0_i32_0 : i32, i32
  }
  func.func @transform_2(%arg0: i32) -> (i32, i32) {
    %c0_i32 = arith.constant 0 : i32
    %c0_i32_0 = arith.constant 0 : i32
    %c0_i32_1 = arith.constant 0 : i32
    return %c0_i32, %c0_i32_0 : i32, i32
  }
  func.func @transform_3(%arg0: i32) -> (i32, i32) {
    %c0_i32 = arith.constant 0 : i32
    %c0_i32_0 = arith.constant 0 : i32
    return %arg0, %c0_i32 : i32, i32
  }
}

</mosaic_0001>

<bundles_post_ra>
// kernel: tpu_custom_call.1
= control target key start
LH: loop header
LB: loop body
LE: loop exit
PB: predicated region body
PF: predicated region fallthrough
CT: control target
= control target key end

     0   :  { %8 = vsyncpa [#allocation3], 0  ;;  %s275_s0 = inlined_call_operand.hbm [shape: f32[8,32], index: 0, kind: input, shape index: {}]   ;;  %s276_s1 = inlined_call_operand.hbm [shape: f32[32,64], index: 1, kind: input, shape index: {}]   ;;  %s277_s2 = inlined_call_operand.vmem [shape: f32[1,64], index: 2, kind: input, shape index: {}]   ;;  %s278_s3 = inlined_call_operand.hbm [shape: f32[8,64], index: 3, kind: output, shape index: {}]  }
   0x1   :  { %9 = vsyncpa [#allocation6], 0 }
   0x2   :  { %10 = vsyncpa [#allocation4], 0  ;;  %s236_s12 = smov [#allocation2]   ;;  %s237_s14 = smov [#allocation5]  }
   0x3   :  { %s17_s13 = sshll.u32 %s236_s12, 4  ;;  %s26_s15 = sshll.u32 %s237_s14, 4  ;;  %s18_s13 = int_to_ptr.vmem [resolvable:$true] %s17_s13  ;;  %s27_s15 = int_to_ptr.vmem [resolvable:$true] %s26_s15 }
   0x4   :  { %s178_s16 = scalar_lea.vmem %s18_s13, 128  ;;  %p183_p1 = scmp.lt.s32.totalorder %s18_s13, %s18_s13 }
   0x5   :  { %p179_p0 = scmp.ne.s32.totalorder %s18_s13, %s178_s16  ;;  %p184_p2 = scmp.lt.s32.totalorder %s178_s16, %s178_s16 }
   0x7   :  { %p185_p3 = por %p184_p2, %p183_p1 }
   0x9   :  { %p186_p4 = pnand %p185_p3, %p179_p0 }
   0xb   :  { %189 = shalt.err (!%p186_p4)
}
   0xc   :  { %20 = dma.hbm_to_vmem [thread:$0]  %s275_s0, 128, %s18_s13, [#allocation3]  }
   0xd   :  { %s198_s19 = scalar_lea.vmem %s27_s15, 512  ;;  %p203_p6 = scmp.lt.s32.totalorder %s27_s15, %s27_s15 }
   0xe   :  { %p199_p5 = scmp.ne.s32.totalorder %s27_s15, %s198_s19  ;;  %p204_p7 = scmp.lt.s32.totalorder %s198_s19, %s198_s19 }
  0x10   :  { %p205_p8 = por %p204_p7, %p203_p6 }
  0x12   :  { %p206_p9 = pnand %p205_p8, %p199_p5 }
  0x14   :  { %209 = shalt.err (!%p206_p9)
}
  0x15   :  { %s238_s20 = smov 128   ;;  %s239_s21 = smov 8  }
  0x16   :  { %32 = dma.hbm_to_vmem [thread:$0]  %s276_s1, 512, %s27_s15, [#allocation6], %s238_s20, %s238_s20, %s239_s21  }
  0x17   :  { %230 = dma.done.wait [#allocation3], 128  }
  0x18   :  { %231 = vsyncadd [#allocation3], 4294967168 }
  0x19   :  { %232 = dma.done.wait [#allocation6], 512  }
  0x1a   :  { %233 = vsyncadd [#allocation6], 4294966784  ;;  %v240_v0 = vmov 0.0   ;;  %vm241_vm0 = vmmov 0   ;;  %v45_v1 = vld [vmem:[#allocation5 + $0x18] sm:$0xff]  ;;  %v44_v2 = vld [vmem:[#allocation5 + $0x10] sm:$0xff] }
  0x1b   :  { %152 = vmatprep.subr.mxu0 %v240_v0  ;;  %160 = vmatprep.mubr.msk.f32.mxu0 %vm241_vm0, %v240_v0  ;;  %v43_v3 = vld [vmem:[#allocation5 + $0x8] sm:$0xff]  ;;  %v42_v4 = vld [vmem:[#allocation5] sm:$0xff]  ;;  %v41_v5 = vld [vmem:[#allocation2] sm:$0xff]  ;;  %vm53_vm1 = vcmask 261120   ;;  %s242_s24 = smov [#allocation7]   ;;  %vm127_vm2 = vcmask 523264  }
  0x1c   :  { %153 = vmatpush3.msra.mxu0 %v45_v1  ;;  %v145_v6 = vld [vmem:[%s277_s2] ss:$0 sm:$0xff]  ;;  %s135_s25 = sshll.u32 %s242_s24, 4  ;;  %s136_s25 = int_to_ptr.vmem [resolvable:$true] %s135_s25 }
  0x1d   :  { %154 = vmatprep.subr.mxu0 %v240_v0  ;;  %s210_s26 = scalar_lea.vmem %s136_s25, 128  ;;  %p215_p11 = scmp.lt.s32.totalorder %s136_s25, %s136_s25 }
  0x1e   :  { %155 = vmatpush3.msra.mxu0 %v44_v2  ;;  %p211_p10 = scmp.ne.s32.totalorder %s136_s25, %s210_s26  ;;  %p216_p12 = scmp.lt.s32.totalorder %s210_s26, %s210_s26 }
  0x1f   :  { %156 = vmatprep.subr.mxu0 %v240_v0 }
  0x20   :  { %157 = vmatpush3.msra.mxu0 %v43_v3  ;;  %p217_p13 = por %p216_p12, %p215_p11 }
  0x21   :  { %158 = vmatprep.subr.mxu0 %v240_v0 }
  0x22   :  { %159 = vmatpush3.msra.mxu0 %v42_v4  ;;  %p218_p0 = pnand %p217_p13, %p211_p10 }
  0x23   :  { %161 = vmatmul.mubr.msk.f32.vlgmr.msra.gmra.mxu0 %vm53_vm1, %v41_v5 }
  0xe3   :  { %v123_v7 = vpop.f32.mrf.mxu0 }
  0xe4   :  { %v124_v8 = vadd.f32 %v145_v6, %v123_v7 }
  0xe5   :  { %v162_v9 = vpop.f32.mrf.mxu0 }
  0xe6   :  { %128 = vst.msk [vmem:[#allocation7] sm:$0xff] %vm127_vm2, %v124_v8 }
  0xe7   :  { %221 = shalt.err (!%p218_p0)
}
  0xe8   :  { %138 = dma.vmem_to_hbm [thread:$0]  %s136_s25, 128, %s278_s3, [#allocation4]  }
  0xe9   :  { %234 = dma.done.wait [#allocation4], 128  }
  0xea   :  { %235 = vsyncadd [#allocation4], 4294967168 }
  0xeb   :  { %142 = vsyncpa [#allocation3], 1 }
  0xec   :  { %143 = vsyncpa [#allocation6], 1 }
  0xed   :  { %144 = vsyncpa [#allocation4], 1 }

</bundles_post_ra>
